<compile_context>
chip_gen: v7x
topology: tpu7x:2x2x1
jax: 0.10.0
libtpu: 0.0.40
codegen_flags: <defaults>
</compile_context>

<pallas_src>
import functools

import jax
import jax.numpy as jnp
from jax import lax
from jax.experimental import pallas as pl
from jax.experimental.pallas import tpu as pltpu

EPS = 1e-5

# Whole-branch-resident fused fast path threshold (f32 working-set bytes).
_FUSED_F32_BYTES = 2 * 1024 * 1024
# Per-block byte budget for the tiled path (~85% of HBM roofline already at
# 0.5-1 MiB tiles; double-buffered in + out stays ~4x this).
_BLOCK_BUDGET_BYTES = 1 * 1024 * 1024
_MAX_LANE_TILE = 1024


def _round_up(x, m):
    return ((x + m - 1) // m) * m


def _sublane_multiple(dtype):
    # 8 for 4-byte, 16 for 2-byte, 32 for 1-byte dtypes.
    return max(8, 32 // max(1, jnp.dtype(dtype).itemsize))


def _pick_tiles(rows, hw, dtype):
    itemsize = jnp.dtype(dtype).itemsize
    sub = _sublane_multiple(dtype)
    # Lane tile: multiple of 128.  Prefer an exact divisor of HW (no tail
    # masking); otherwise use a cdiv grid and mask the tail tile.
    cap = min(_MAX_LANE_TILE, _round_up(hw, 128))
    hw_blk = 0
    for d in range(cap, 0, -128):
        if hw % d == 0:
            hw_blk = d
            break
    if hw_blk == 0:
        hw_blk = min(cap, 512)
    # Row tile: multiple of `sub`, sized to the per-block byte budget.
    cap_rows = max(sub, (_BLOCK_BUDGET_BYTES // (hw_blk * itemsize)) // sub * sub)
    row_blk = min(cap_rows, _round_up(rows, sub))
    return row_blk, hw_blk


# --------------------------------------------------------------------------
# Fused fast path: whole branch resident in VMEM, one read + one write.
# --------------------------------------------------------------------------
def _bn_fused_kernel(x_ref, gamma_ref, beta_ref, o_ref, *, inv_count):
    x = x_ref[...].astype(jnp.float32)                       # (N, C, HW)
    s = jnp.sum(jnp.sum(x, axis=0, keepdims=True), axis=2, keepdims=True)
    mean = s * inv_count                                     # (1, C, 1)
    centered = x - mean
    sq = jnp.sum(jnp.sum(centered * centered, axis=0, keepdims=True),
                 axis=2, keepdims=True)
    var = sq * inv_count                                     # exact biased var
    inv_std = lax.rsqrt(var + EPS)
    scale = gamma_ref[...] * inv_std                         # (1, C, 1)
    o_ref[...] = (centered * scale + beta_ref[...]).astype(o_ref.dtype)


# --------------------------------------------------------------------------
# Tiled path, pass 1: per-row partial sums (sublane-dense (N*C, HW) layout).
# --------------------------------------------------------------------------
def _bn_stats_kernel(x_ref, sum_ref, sq_ref, *, hw_total, hw_blk, mask_tail):
    j = pl.program_id(1)

    @pl.when(j == 0)
    def _():
        sum_ref[...] = jnp.zeros_like(sum_ref)
        sq_ref[...] = jnp.zeros_like(sq_ref)

    x = x_ref[...].astype(jnp.float32)                       # (row_blk, hw_blk)
    if mask_tail:
        col = lax.broadcasted_iota(jnp.int32, x.shape, 1) + j * hw_blk
        x = jnp.where(col < hw_total, x, 0.0)
    sum_ref[...] += jnp.sum(x, axis=-1, keepdims=True)       # (row_blk, 1)
    sq_ref[...] += jnp.sum(x * x, axis=-1, keepdims=True)


# --------------------------------------------------------------------------
# Tiled path, pass 2: y = x * scale + bias (per-row scale/bias broadcast).
# --------------------------------------------------------------------------
def _bn_apply_kernel(x_ref, scale_ref, bias_ref, o_ref):
    x = x_ref[...].astype(scale_ref.dtype)                   # f32, or bf16 on bf16 inputs
    o_ref[...] = (x * scale_ref[...] + bias_ref[...]).astype(o_ref.dtype)


def _bn2d_tiled(xr, gamma, beta, N, C, HW, compute_dtype):
    rows = N * C
    row_blk, hw_blk = _pick_tiles(rows, HW, xr.dtype)
    grid = (pl.cdiv(rows, row_blk), pl.cdiv(HW, hw_blk))
    mask_tail = (HW % hw_blk) != 0
    inv_count = 1.0 / float(N * HW)

    x_spec = pl.BlockSpec((row_blk, hw_blk), lambda i, j: (i, j))
    vec_spec = pl.BlockSpec((row_blk, 1), lambda i, j: (i, 0))

    # Pass 1: per-row sum / sum-of-squares, accumulated in the resident
    # output block along the HW ("arbitrary") axis; rows axis is "parallel"
    # so v7x can split the stats read across both TensorCores.
    row_sum, row_sq = pl.pallas_call(
        functools.partial(_bn_stats_kernel, hw_total=HW, hw_blk=hw_blk,
                          mask_tail=mask_tail),
        out_shape=(jax.ShapeDtypeStruct((rows, 1), jnp.float32),
                   jax.ShapeDtypeStruct((rows, 1), jnp.float32)),
        grid_spec=pltpu.PrefetchScalarGridSpec(
            num_scalar_prefetch=0,
            grid=grid,
            in_specs=[x_spec],
            out_specs=(vec_spec, vec_spec)),
        compiler_params=pltpu.CompilerParams(
            dimension_semantics=("parallel", "arbitrary")),
    )(xr)

    # Tiny fold over N + affine fuse in plain JAX (negligible cost).
    ch_sum = jnp.sum(row_sum.reshape(N, C), axis=0)
    ch_sq = jnp.sum(row_sq.reshape(N, C), axis=0)
    mean = ch_sum * inv_count
    # Biased variance via E[x^2] - E[x]^2 with f32 accumulation.
    # TODO(synk): switch to shifted/Welford per-tile partials if bit-level
    # parity with PyTorch is required for data with very large mean/std ratio.
    var = jnp.maximum(ch_sq * inv_count - mean * mean, 0.0)
    inv_std = lax.rsqrt(var + EPS)
    scale_c = gamma.astype(jnp.float32) * inv_std
    bias_c = beta.astype(jnp.float32) - mean * scale_c
    scale_r = jnp.broadcast_to(scale_c[None, :], (N, C)).reshape(rows, 1)
    bias_r = jnp.broadcast_to(bias_c[None, :], (N, C)).reshape(rows, 1)
    scale_r = scale_r.astype(compute_dtype)
    bias_r = bias_r.astype(compute_dtype)

    # Pass 2: elementwise y = x * scale + bias, fully parallel grid.
    y = pl.pallas_call(
        _bn_apply_kernel,
        out_shape=jax.ShapeDtypeStruct((rows, HW), xr.dtype),
        grid_spec=pltpu.PrefetchScalarGridSpec(
            num_scalar_prefetch=0,
            grid=grid,
            in_specs=[x_spec, vec_spec, vec_spec],
            out_specs=x_spec),
        compiler_params=pltpu.CompilerParams(
            dimension_semantics=("parallel", "parallel")),
    )(xr, scale_r, bias_r)
    return y


@functools.partial(jax.jit, static_argnames=("fused_threshold",))
def _bn2d_one(x, gamma, beta, fused_threshold=_FUSED_F32_BYTES):
    """Training-mode BatchNorm2d for one branch, NCHW in -> NCHW out."""
    N, C, H, W = x.shape
    HW = H * W
    inv_count = 1.0 / float(N * HW)
    # bf16 FMA in the apply path on bf16 inputs (native on v6e/v7x; Mosaic
    # handles it correctly on v5e); f32 otherwise.
    compute_dtype = jnp.bfloat16 if x.dtype == jnp.bfloat16 else jnp.float32

    if N * C * HW * 4 <= fused_threshold:
        # Whole branch resident: single fused kernel, one launch.
        xr = x.reshape(N, C, HW)               # free: merges contiguous dims
        gamma_c = gamma.reshape(1, C, 1).astype(jnp.float32)
        beta_c = beta.reshape(1, C, 1).astype(jnp.float32)
        y = pl.pallas_call(
            functools.partial(_bn_fused_kernel, inv_count=inv_count),
            out_shape=jax.ShapeDtypeStruct((N, C, HW), x.dtype),
        )(xr, gamma_c, beta_c)
        return y.reshape(N, C, H, W)

    xr = x.reshape(N * C, HW)                  # free, sublane-dense for any C
    y = _bn2d_tiled(xr, gamma, beta, N, C, HW, compute_dtype)
    return y.reshape(N, C, H, W)


def batchnorm2d_parallel(x_list, gamma, beta):
    """Apply per-branch BatchNorm2d (training-mode batch statistics).

    x_list: list of P arrays, each NCHW (N, C, H, W)
    gamma, beta: (P, C) affine parameters (one BN layer per branch)
    returns: list of P arrays, each NCHW
    """
    return [_bn2d_one(x, gamma[p], beta[p]) for p, x in enumerate(x_list)]


def _reference(x_list, gamma, beta):
    outs = []
    for p, x in enumerate(x_list):
        xf = x.astype(jnp.float32)
        mean = jnp.mean(xf, axis=(0, 2, 3), keepdims=True)
        var = jnp.mean((xf - mean) ** 2, axis=(0, 2, 3), keepdims=True)
        g = gamma[p].reshape(1, -1, 1, 1)
        b = beta[p].reshape(1, -1, 1, 1)
        outs.append(((xf - mean) / jnp.sqrt(var + EPS) * g + b).astype(x.dtype))
    return outs


if __name__ == "__main__":
    # Shapes consistent with the module: num_parallel=2, num_features=4,
    # batch=2, spatial=16x16.
    P, N, C, H, W = 2, 2, 4, 16, 16

    key = jax.random.PRNGKey(0)
    keys = jax.random.split(key, P)
    x_list = [
        jax.random.normal(keys[p], (N, C, H, W), dtype=jnp.float32)
        for p in range(P)
    ]

    # Non-trivial per-branch affine params (PyTorch default is gamma=1, beta=0).
    gamma = 1.0 + 0.1 * jnp.arange(P * C, dtype=jnp.float32).reshape(P, C)
    beta = 0.01 * jnp.arange(P * C, dtype=jnp.float32).reshape(P, C)

    # Main path (small tensors -> fused single-launch kernel per branch).
    outs = batchnorm2d_parallel(x_list, gamma, beta)
    outs = [jax.block_until_ready(o) for o in outs]
    refs = _reference(x_list, gamma, beta)
    for o, r in zip(outs, refs):
        assert o.shape == r.shape and o.dtype == r.dtype
        assert float(jnp.max(jnp.abs(o - r))) < 1e-4

    # Also exercise the tiled two-pass path (forced), including the masked
    # tail lane tile (7x7) and multi-tile HW reduction (36x36).
    for idx, (n, c, h, w) in enumerate([(2, 4, 16, 16), (2, 8, 7, 7),
                                        (2, 8, 36, 36)]):
        xt = jax.random.normal(jax.random.PRNGKey(2 + idx), (n, c, h, w),
                               dtype=jnp.float32)
        g = 1.0 + 0.05 * jnp.arange(c, dtype=jnp.float32)
        b = 0.02 * jnp.arange(c, dtype=jnp.float32)
        out_t = jax.block_until_ready(_bn2d_one(xt, g, b, fused_threshold=0))
        ref_t = _reference([xt], g[None], b[None])[0]
        assert out_t.shape == ref_t.shape and out_t.dtype == ref_t.dtype
        assert float(jnp.max(jnp.abs(out_t - ref_t))) < 1e-4

    print("KERNEL_OK")
</pallas_src>

<mosaic_0001>
module attributes {stable_mosaic.version = 11 : i64} {
  func.func @_bn_fused_kernel(%arg0: memref<2x4x256xf32, #tpu.memory_space<vmem>>, %arg1: memref<1x4x1xf32, #tpu.memory_space<vmem>>, %arg2: memref<1x4x1xf32, #tpu.memory_space<vmem>>, %arg3: memref<2x4x256xf32, #tpu.memory_space<vmem>>) attributes {dimension_semantics = [], scalar_prefetch = 0 : i64, scratch_operands = 0 : i64, tpu.core_type = #tpu.core_type<tc>} {
    %c0 = arith.constant 0 : index
    %c0_0 = arith.constant 0 : index
    %c0_1 = arith.constant 0 : index
    %0 = vector.load %arg0[%c0, %c0_0, %c0_1] : memref<2x4x256xf32, #tpu.memory_space<vmem>>, vector<2x4x256xf32>
    %cst = arith.constant dense<0.000000e+00> : vector<4x256xf32>
    %1 = vector.multi_reduction <add>, %0, %cst [0] : vector<2x4x256xf32> to vector<4x256xf32>
    %2 = vector.shape_cast %1 : vector<4x256xf32> to vector<1x4x256xf32>
    %cst_2 = arith.constant dense<0.000000e+00> : vector<1x4xf32>
    %3 = vector.multi_reduction <add>, %2, %cst_2 [2] : vector<1x4x256xf32> to vector<1x4xf32>
    %4 = vector.shape_cast %3 : vector<1x4xf32> to vector<1x4x1xf32>
    %cst_3 = arith.constant 0.001953125 : f32
    %5 = vector.broadcast %cst_3 : f32 to vector<1x4x1xf32>
    %6 = arith.mulf %4, %5 : vector<1x4x1xf32>
    %7 = vector.broadcast %6 : vector<1x4x1xf32> to vector<2x4x256xf32>
    %8 = arith.subf %0, %7 : vector<2x4x256xf32>
    %9 = arith.mulf %8, %8 : vector<2x4x256xf32>
    %cst_4 = arith.constant dense<0.000000e+00> : vector<4x256xf32>
    %10 = vector.multi_reduction <add>, %9, %cst_4 [0] : vector<2x4x256xf32> to vector<4x256xf32>
    %11 = vector.shape_cast %10 : vector<4x256xf32> to vector<1x4x256xf32>
    %cst_5 = arith.constant dense<0.000000e+00> : vector<1x4xf32>
    %12 = vector.multi_reduction <add>, %11, %cst_5 [2] : vector<1x4x256xf32> to vector<1x4xf32>
    %13 = vector.shape_cast %12 : vector<1x4xf32> to vector<1x4x1xf32>
    %cst_6 = arith.constant 0.001953125 : f32
    %14 = vector.broadcast %cst_6 : f32 to vector<1x4x1xf32>
    %15 = arith.mulf %13, %14 : vector<1x4x1xf32>
    %cst_7 = arith.constant 9.99999974E-6 : f32
    %16 = vector.broadcast %cst_7 : f32 to vector<1x4x1xf32>
    %17 = arith.addf %15, %16 : vector<1x4x1xf32>
    %18 = math.rsqrt %17 : vector<1x4x1xf32>
    %c0_8 = arith.constant 0 : index
    %c0_9 = arith.constant 0 : index
    %c0_10 = arith.constant 0 : index
    %19 = vector.load %arg1[%c0_8, %c0_9, %c0_10] : memref<1x4x1xf32, #tpu.memory_space<vmem>>, vector<1x4x1xf32>
    %20 = arith.mulf %19, %18 : vector<1x4x1xf32>
    %21 = vector.broadcast %20 : vector<1x4x1xf32> to vector<2x4x256xf32>
    %22 = arith.mulf %8, %21 : vector<2x4x256xf32>
    %c0_11 = arith.constant 0 : index
    %c0_12 = arith.constant 0 : index
    %c0_13 = arith.constant 0 : index
    %23 = vector.load %arg2[%c0_11, %c0_12, %c0_13] : memref<1x4x1xf32, #tpu.memory_space<vmem>>, vector<1x4x1xf32>
    %24 = vector.broadcast %23 : vector<1x4x1xf32> to vector<2x4x256xf32>
    %25 = arith.addf %22, %24 : vector<2x4x256xf32>
    %c0_14 = arith.constant 0 : index
    %c0_15 = arith.constant 0 : index
    %c0_16 = arith.constant 0 : index
    %26 = vector.load %arg3[%c0_14, %c0_15, %c0_16] : memref<2x4x256xf32, #tpu.memory_space<vmem>>, vector<2x4x256xf32>
    tpu.vector_store %arg3[%c0_14, %c0_15, %c0_16], %25 {strides = array<i32>} : memref<2x4x256xf32, #tpu.memory_space<vmem>>, vector<2x4x256xf32>,
    return
  }
}

</mosaic_0001>

<bundles_post_ra>
// kernel: _bn2d_one.1
= control target key start
LH: loop header
LB: loop body
LE: loop exit
PB: predicated region body
PF: predicated region fallthrough
CT: control target
= control target key end

     0   :  { %vm22_vm0 = vcmask 1043456   ;;  %v113_v13 = vmov 839922192   ;;  %v39_v15 = vlaneseq  ;;  %v114_v37 = vmov 0   ;;  %s165_s0 = inlined_call_operand.vmem [shape: f32[2,4,256], index: 0, kind: input, shape index: {}]   ;;  %s166_s1 = inlined_call_operand.vmem [shape: f32[1,4,1], index: 1, kind: input, shape index: {}]   ;;  %s167_s2 = inlined_call_operand.vmem [shape: f32[1,4,1], index: 2, kind: input, shape index: {}]   ;;  %s168_s3 = inlined_call_operand.vmem [shape: f32[2,4,256], index: 3, kind: output, shape index: {}]  }
   0x1   :  { %v14_v0 = vld [vmem:[%s165_s0] sm:$0xff]  ;;  %v15_v1 = vld [vmem:[%s165_s0 + $0x8] sm:$0xff]  ;;  %v37_v14 = vunpack.c.l.s4 %v113_v13  ;;  %107 = vset.pattern.permute.xlu1 %v114_v37  ;;  %108 = vset.pattern.permute.xlu0 %v114_v37 }
   0x2   :  { %v18_v2 = vcombine.high %v14_v0, %v14_v0  ;;  %v19_v3 = vcombine.high %v15_v1, %v15_v1  ;;  %v23_v4 = vsel %vm22_vm0, %v14_v0, 0.0  ;;  %v24_v5 = vsel %vm22_vm0, %v15_v1, 0.0  ;;  %v68_v41 = vld [vmem:[%s166_s1] sm:$0xf] }
   0x3   :  { %v25_v6 = vadd.f32 %v24_v5, %v23_v4  ;;  %v38_v16 = vunpack.c.0.s8 %v37_v14  ;;  %v40_v17 = vshrl.u32 %v39_v15, 7  ;;  %v84_v44 = vld [vmem:[%s167_s2] sm:$0xf] }
   0x4   :  { %v26_v7 = vsel %vm22_vm0, %v18_v2, 0.0  ;;  %v27_v8 = vsel %vm22_vm0, %v19_v3, 0.0 }
   0x5   :  { %v28_v9 = vadd.f32 %v27_v8, %v26_v7  ;;  %v29_v10 = vsel %vm22_vm0, %v25_v6, 0.0  ;;  %v41_v18 = vsub.s32 %v38_v16, %v40_v17 }
   0x7   :  { %v30_v11 = vsel %vm22_vm0, %v28_v9, 0.0 }
   0x8   :  { %v31_v12 = vadd.f32 %v30_v11, %v29_v10 }
   0xa   :  { %32 = vadd.xlane.f32.xlu0 %v31_v12 }
  0x97   :  { %v33_v19 = vpop.xlane.xlu0 %32 }
  0x98   :  { %v34_v20 = vmul.f32 0.001953125, %v33_v19 }
  0x9a   :  { %v42_v21 = vrot.slane %v34_v20, %v41_v18 }
  0x9c   :  { %v44_v22 = vsub.f32 %v14_v0, %v42_v21  ;;  %v45_v23 = vsub.f32 %v15_v1, %v42_v21 }
  0x9e   :  { %v46_v24 = vmul.f32 %v44_v22, %v44_v22  ;;  %v47_v25 = vmul.f32 %v45_v23, %v45_v23 }
  0xa0   :  { %v50_v26 = vcombine.high %v46_v24, %v46_v24  ;;  %v51_v27 = vcombine.high %v47_v25, %v47_v25  ;;  %v54_v28 = vsel %vm22_vm0, %v46_v24, 0.0  ;;  %v55_v29 = vsel %vm22_vm0, %v47_v25, 0.0 }
  0xa1   :  { %v56_v30 = vadd.f32 %v55_v29, %v54_v28 }
  0xa2   :  { %v57_v31 = vsel %vm22_vm0, %v50_v26, 0.0  ;;  %v58_v32 = vsel %vm22_vm0, %v51_v27, 0.0 }
  0xa3   :  { %v59_v33 = vadd.f32 %v58_v32, %v57_v31  ;;  %v60_v34 = vsel %vm22_vm0, %v56_v30, 0.0 }
  0xa5   :  { %v61_v35 = vsel %vm22_vm0, %v59_v33, 0.0 }
  0xa6   :  { %v62_v36 = vadd.f32 %v61_v35, %v60_v34 }
  0xa8   :  { %63 = vadd.xlane.f32.xlu0 %v62_v36 }
 0x135   :  { %v64_v38 = vpop.xlane.xlu0 %63 }
 0x136   :  { %v65_v39 = vmul.f32 0.001953125, %v64_v38 }
 0x138   :  { %v66_v40 = vadd.f32 1e-05, %v65_v39 }
 0x13a   :  { %111 = vrsqrt.f32 %v66_v40 }
 0x144   :  { %v112_v42 = vpop.eup %111 }
 0x145   :  { %v69_v43 = vmul.f32 %v112_v42, %v68_v41 }
 0x147   :  { %72 = vperm.xlu1 %107, %v69_v43  }
 0x14b   :  { %87 = vperm.xlu1 %107, %v84_v44  }
 0x1c6   :  { %v73_v45 = vpop.permute.xlu1 %72 }
 0x1c7   :  { %v80_v46 = vrot.slane %v73_v45, %v41_v18 }
 0x1c9   :  { %v82_v48 = vmul.f32 %v80_v46, %v44_v22  ;;  %v83_v49 = vmul.f32 %v80_v46, %v45_v23 }
 0x1ca   :  { %v88_v47 = vpop.permute.xlu1 %87 }
 0x1cb   :  { %v95_v50 = vrot.slane %v88_v47, %v41_v18 }
 0x1cd   :  { %v97_v51 = vadd.f32 %v95_v50, %v82_v48  ;;  %v98_v52 = vadd.f32 %v95_v50, %v83_v49 }
 0x1cf   :  { %99 = vst [vmem:[%s168_s3] sm:$0xff] %v97_v51  ;;  %100 = vst [vmem:[%s168_s3 + $0x8] sm:$0xff] %v98_v52 }

</bundles_post_ra>
